<compile_context>
chip_gen: v6e
topology: v6e:2x2x1
jax: 0.10.0
libtpu: 0.0.40
codegen_flags: <defaults>
</compile_context>

<pallas_src>
import functools

import jax
import jax.numpy as jnp
from jax.experimental import pallas as pl
from jax.experimental.pallas import tpu as pltpu


def _round_up(x, m):
    return (x + m - 1) // m * m


# ---------------------------------------------------------------------------
# Fused multi-layer GCN kernel.
#
# Grid = (num_layers, num_row_tiles); both axes sequential ("arbitrary").
#   xw0_hbm : (2*N_pad, C_pad)  bf16  pl.ANY; rows [0, N_pad) = x @ W_0, rest 0.
#   a_ref   : resident -> (N_pad, N_pad) bf16 (constant index, DMA'd once)
#             streamed -> (TM, N_pad)    bf16 (row tile t, re-streamed per layer)
#   w_ref   : (1, C_pad, C_pad) bf16  W_{l+1} (clamped at the last layer)
#   b_ref   : (1, 1, C_pad)     f32   b_l
#   o_ref   : (TM, C_pad)       f32   output row tile (written only at l==last)
# Scratch:
#   xw_ref  : (2*N_pad, C_pad)  bf16  XW ping-pong banks (bank l%2 = current)
#   sem     : DMA semaphore for the one-time XW_0 load
# ---------------------------------------------------------------------------
def _fused_gcn_kernel(xw0_hbm, a_ref, w_ref, b_ref, o_ref, xw_ref, sem,
                      *, n_pad, tm, a_resident):
    l = pl.program_id(0)
    t = pl.program_id(1)
    num_layers = pl.num_programs(0)

    # ---- one-time: DMA the precomputed XW_0 into bank 0 -------------------
    @pl.when(jnp.logical_and(l == 0, t == 0))
    def _():
        cp = pltpu.make_async_copy(xw0_hbm, xw_ref, sem)
        cp.start()
        cp.wait()

    src = jax.lax.rem(l, 2)          # bank holding XW of the current layer
    dst = 1 - src                    # bank receiving XW of the next layer

    # Current-layer XW (all N rows are needed by every row tile of A_hat).
    xw_cur = xw_ref[pl.ds(pl.multiple_of(src * n_pad, tm), n_pad), :]

    if a_resident:
        a_tile = a_ref[pl.ds(pl.multiple_of(t * tm, tm), tm), :]
    else:
        a_tile = a_ref[...]

    # (TM, N_pad) @ (N_pad, C_pad): bf16 operands, f32 accumulate, f32 epilogue.
    y = jnp.dot(a_tile, xw_cur, preferred_element_type=jnp.float32) + b_ref[0]

    # All but the last layer: ReLU + incremental projection into the NEXT
    # layer's XW bank (rows of this tile only -> no bank conflicts, and the
    # full bank is complete before layer l+1 starts since the grid is serial).
    @pl.when(l < num_layers - 1)
    def _():
        h = jnp.maximum(y, 0.0).astype(xw_ref.dtype)
        xw_next = jnp.dot(h, w_ref[0], preferred_element_type=jnp.float32)
        row0 = pl.multiple_of(dst * n_pad + t * tm, tm)
        xw_ref[pl.ds(row0, tm), :] = xw_next.astype(xw_ref.dtype)
        # NOTE: padded rows [n, n_pad) become relu(b_l) @ W_{l+1} here; they
        # are nullified by A_hat's zero columns, so valid outputs are exact.

    # Last layer: write the output row tile (only HBM writeback of the kernel).
    @pl.when(l == num_layers - 1)
    def _():
        o_ref[...] = y.astype(o_ref.dtype)


# ---------------------------------------------------------------------------
# Wrapper: padding, weight stacking, VMEM budgeting, single fused pallas_call
# ---------------------------------------------------------------------------
def gcn_forward_fused(x, edge_index, params, *, a_hat=None, row_tile=256):
    n, _ = x.shape
    num_layers = len(params)
    out_c = params[-1][0].shape[1]

    # Lane-dense channel padding: only layer OUTPUT widths matter (the raw
    # input width never enters the kernel: XW_0 is precomputed by XLA).
    c_pad = _round_up(max(w.shape[1] for w, _ in params), 128)
    n_pad = _round_up(n, row_tile)
    num_tiles = n_pad // row_tile

    # ---- A_hat: dense symmetrically-normalized adjacency, bf16, padded ----
    if a_hat is None:
        a_hat = build_normalized_adjacency(edge_index, n)
    a_pad = jnp.zeros((n_pad, n_pad), jnp.bfloat16)
    a_pad = a_pad.at[:n, :n].set(a_hat.astype(jnp.bfloat16))
    # TODO(synk): int8 (v5e/v6e) / fp8 e4m3 (v7x) A_hat to halve HBM traffic
    # when A cannot be kept resident.

    # ---- XW_0 precomputed by XLA; laid out as the full 2-bank init buffer --
    w0, _ = params[0]
    xw0_init = jnp.zeros((2 * n_pad, c_pad), jnp.bfloat16)
    xw0_init = xw0_init.at[:n, :w0.shape[1]].set(
        jnp.dot(x, w0, preferred_element_type=jnp.float32).astype(jnp.bfloat16))

    # ---- weights of layers 1..L-1 in bf16 (layer l fetches W_{l+1}) -------
    n_wk = max(num_layers - 1, 1)
    wk_stack = jnp.zeros((n_wk, c_pad, c_pad), jnp.bfloat16)
    for i in range(1, num_layers):
        w, _ = params[i]
        ci, co = w.shape
        wk_stack = wk_stack.at[i - 1, :ci, :co].set(w.astype(jnp.bfloat16))

    b_stack = jnp.zeros((num_layers, 1, c_pad), jnp.float32)
    for i, (_, b) in enumerate(params):
        bv = b.reshape(-1)
        b_stack = b_stack.at[i, 0, :bv.shape[0]].set(bv)

    # ---- VMEM budgeting: resident A when it fits, tight vmem limit --------
    try:
        phys_vmem = int(pltpu.get_tpu_info().vmem_capacity_bytes)
    except Exception:
        phys_vmem = 64 * 1024 * 1024            # v7x-conservative fallback

    xw_bank_bytes = 2 * n_pad * c_pad * 2       # 2 bf16 banks (scratch)
    w_bytes = 2 * c_pad * c_pad * 2             # double-buffered bf16 W block
    b_bytes = 2 * c_pad * 4
    out_bytes = 2 * row_tile * c_pad * 4        # double-buffered output tile
    a_resident_bytes = 2 * n_pad * n_pad * 2    # worst case (2 buffers)
    a_stream_bytes = 2 * row_tile * n_pad * 2
    base = xw_bank_bytes + w_bytes + b_bytes + out_bytes

    budget = int(phys_vmem * 0.7)
    a_resident = (base + a_resident_bytes) <= budget
    need = base + (a_resident_bytes if a_resident else a_stream_bytes)
    vmem_limit = int(min(max(need * 1.3 + (2 << 20), 16 << 20),
                         phys_vmem * 0.9))

    kernel = functools.partial(_fused_gcn_kernel, n_pad=n_pad, tm=row_tile,
                               a_resident=a_resident)

    if a_resident:
        # Constant index map -> A_hat is DMA'd once and never re-streamed.
        a_spec = pl.BlockSpec((n_pad, n_pad), lambda l, t: (0, 0))
    else:
        a_spec = pl.BlockSpec((row_tile, n_pad), lambda l, t: (t, 0))

    last = num_layers - 1
    n_wk_m1 = n_wk - 1

    flops = (2 * num_layers * n_pad * n_pad * c_pad
             + 2 * (num_layers - 1) * n_pad * c_pad * c_pad)
    bytes_accessed = ((1 if a_resident else num_layers) * n_pad * n_pad * 2
                      + 2 * n_pad * c_pad * 2          # XW_0 init buffer
                      + n_wk * c_pad * c_pad * 2       # W
                      + num_layers * c_pad * 4         # b
                      + n_pad * c_pad * 4)             # out (written once)

    out_pad = pl.pallas_call(
        kernel,
        out_shape=jax.ShapeDtypeStruct((n_pad, c_pad), jnp.float32),
        grid_spec=pltpu.PrefetchScalarGridSpec(
            num_scalar_prefetch=0,
            grid=(num_layers, num_tiles),
            in_specs=[
                pl.BlockSpec(memory_space=pl.ANY),              # XW_0 (DMA once)
                a_spec,                                         # A_hat
                pl.BlockSpec((1, c_pad, c_pad),
                             lambda l, t: (jnp.minimum(l, n_wk_m1), 0, 0)),
                pl.BlockSpec((1, 1, c_pad), lambda l, t: (l, 0, 0)),
            ],
            # Non-final layers collapse to block 0, which is only flushed once
            # it already holds the last layer's tile 0 -> no stale writebacks.
            out_specs=pl.BlockSpec(
                (row_tile, c_pad),
                lambda l, t: (jnp.where(l == last, t, 0), 0)),
            scratch_shapes=[
                pltpu.VMEM((2 * n_pad, c_pad), jnp.bfloat16),   # XW ping-pong
                pltpu.SemaphoreType.DMA(()),                    # XW_0 load sem
            ],
        ),
        compiler_params=pltpu.CompilerParams(
            # Both axes sequential: row tiles of layer l+1 read rows produced
            # by ALL row tiles of layer l through per-core VMEM scratch.
            dimension_semantics=("arbitrary", "arbitrary"),
            vmem_limit_bytes=vmem_limit,
        ),
        cost_estimate=pl.CostEstimate(
            flops=flops, transcendentals=0, bytes_accessed=bytes_accessed),
    )(xw0_init, a_pad, wk_stack, b_stack)

    return out_pad[:n, :out_c]


# ---------------------------------------------------------------------------
# Glue: dense symmetrically-normalized adjacency (plain JAX, built once)
# ---------------------------------------------------------------------------
def build_normalized_adjacency(edge_index, num_nodes):
    """A_hat[dst, src] = deg^{-1/2}[dst] * deg^{-1/2}[src], self-loops added."""
    src = edge_index[0]
    dst = edge_index[1]
    loops = jnp.arange(num_nodes, dtype=edge_index.dtype)
    src = jnp.concatenate([src, loops])
    dst = jnp.concatenate([dst, loops])
    a = jnp.zeros((num_nodes, num_nodes), jnp.float32)
    a = a.at[dst, src].add(1.0)                 # rows = targets, cols = sources
    deg = a.sum(axis=1)                         # in-degree (incl. self loop)
    dinv = jnp.where(deg > 0, jax.lax.rsqrt(deg), 0.0)
    return dinv[:, None] * a * dinv[None, :]


# ---------------------------------------------------------------------------
# Parameter init (glorot-like W, zero bias — PyG GCNConv defaults)
# ---------------------------------------------------------------------------
def init_gcn_params(key, in_channels, hidden_channels, out_channels, num_layers):
    dims = [in_channels] + [hidden_channels] * (num_layers - 1) + [out_channels]
    params = []
    for i in range(num_layers):
        key, wk = jax.random.split(key)
        fan_in, fan_out = dims[i], dims[i + 1]
        limit = jnp.sqrt(6.0 / (fan_in + fan_out))
        w = jax.random.uniform(wk, (fan_in, fan_out), jnp.float32, -limit, limit)
        b = jnp.zeros((1, fan_out), jnp.float32)
        params.append((w, b))
    return params


@jax.jit
def gcn_forward(x, edge_index, params):
    return gcn_forward_fused(x, edge_index, params)


# ---------------------------------------------------------------------------
if __name__ == "__main__":
    # Small synthetic graph: 16 nodes, 8 input features, 32 hidden, 4 outputs.
    N, IN_C, HID_C, OUT_C, NUM_LAYERS = 16, 8, 32, 4, 3
    NUM_EDGES = 40

    key = jax.random.PRNGKey(0)
    kx, ke, kp = jax.random.split(key, 3)

    x = jax.random.normal(kx, (N, IN_C), jnp.float32)
    edge_index = jax.random.randint(ke, (2, NUM_EDGES), 0, N, dtype=jnp.int32)

    params = init_gcn_params(kp, IN_C, HID_C, OUT_C, NUM_LAYERS)

    out = gcn_forward(x, edge_index, params)
    out = jax.block_until_ready(out)

    assert out.shape == (N, OUT_C), out.shape
    assert bool(jnp.all(jnp.isfinite(out)))

    # Pure-JAX f32 reference (bf16 A_hat / W / XW in the kernel -> loose tol).
    a_hat_ref = build_normalized_adjacency(edge_index, N)
    h = x
    for i, (w, b) in enumerate(params):
        h = a_hat_ref @ (h @ w) + b
        if i != NUM_LAYERS - 1:
            h = jnp.maximum(h, 0.0)
    assert bool(jnp.allclose(out, h, rtol=5e-2, atol=5e-2)), float(
        jnp.max(jnp.abs(out - h)))

    print("KERNEL_OK")
</pallas_src>

<mosaic_0001>
module attributes {stable_mosaic.version = 11 : i64} {
  func.func private @main(%arg0: i32) attributes {dimension_semantics = [#tpu.dimension_semantics<core_parallel>], iteration_bounds = array<i64: 2>, tpu.core_type = #tpu.core_type<sc_scalar_subcore>, window_params = []} {
    return
  }
}

module attributes {stable_mosaic.version = 11 : i64} {
  func.func private @main(%arg0: i32) attributes {dimension_semantics = [#tpu.dimension_semantics<core_parallel>], iteration_bounds = array<i64: 2>, tpu.core_type = #tpu.core_type<sc_scalar_subcore>, window_params = []} {
    return
  }
}

module attributes {stable_mosaic.version = 11 : i64} {
  func.func @_fused_gcn_kernel(%arg0: i32, %arg1: i32, %arg2: memref<512x128xbf16, #tpu.memory_space<any>>, %arg3: memref<256x256xbf16, #tpu.memory_space<vmem>>, %arg4: memref<1x128x128xbf16, #tpu.memory_space<vmem>>, %arg5: memref<1x1x128xf32, #tpu.memory_space<vmem>>, %arg6: memref<256x128xf32, #tpu.memory_space<vmem>>, %arg7: memref<512x128xbf16, #tpu.memory_space<vmem>>, %arg8: memref<!tpu.dma_semaphore, #tpu.memory_space<semaphore_mem>>) attributes {dimension_semantics = [#tpu.dimension_semantics<arbitrary>, #tpu.dimension_semantics<arbitrary>], iteration_bounds = array<i64: 3, 1>, scalar_prefetch = 0 : i64, scratch_operands = 2 : i64, tpu.core_type = #tpu.core_type<tc>, window_params = [{}, {pipeline_mode = #tpu.pipeline_mode<synchronous>, transform_indices = @transform_1, window_bounds = array<i64: 256, 256>}, {transform_indices = @transform_2, window_bounds = array<i64: 1, 128, 128>}, {transform_indices = @transform_3, window_bounds = array<i64: 1, 1, 128>}, {transform_indices = @transform_4, window_bounds = array<i64: 256, 128>}]} {
    %c0_i32 = arith.constant 0 : i32
    %0 = arith.cmpi eq, %arg0, %c0_i32 : i32
    %c0_i32_0 = arith.constant 0 : i32
    %1 = arith.cmpi eq, %arg1, %c0_i32_0 : i32
    %2 = arith.andi %0, %1 : i1
    %3 = arith.extui %2 : i1 to i32
    %c0_i32_1 = arith.constant 0 : i32
    %4 = arith.cmpi ne, %3, %c0_i32_1 : i32
    scf.if %4 {
      tpu.enqueue_dma source(%arg2 : memref<512x128xbf16, #tpu.memory_space<any>>) target(%arg7 : memref<512x128xbf16, #tpu.memory_space<vmem>>) target_semaphore(%arg8 : memref<!tpu.dma_semaphore, #tpu.memory_space<semaphore_mem>>)
      tpu.wait_dma2 semaphore(%arg8 : memref<!tpu.dma_semaphore, #tpu.memory_space<semaphore_mem>>) src(%arg2 : memref<512x128xbf16, #tpu.memory_space<any>>) dst(%arg7 : memref<512x128xbf16, #tpu.memory_space<vmem>>)
    } else {
    }
    %c2_i32 = arith.constant 2 : i32
    %5 = arith.remsi %arg0, %c2_i32 : i32
    %c1_i32 = arith.constant 1 : i32
    %6 = arith.subi %c1_i32, %5 : i32
    %c256_i32 = arith.constant 256 : i32
    %7 = arith.muli %5, %c256_i32 : i32
    %8 = tpu.assume_multiple %7, 256 : i32
    %9 = arith.index_cast %8 : i32 to index
    %c0 = arith.constant 0 : index
    %10 = vector.load %arg7[%9, %c0] : memref<512x128xbf16, #tpu.memory_space<vmem>>, vector<256x128xbf16>
    %c256_i32_2 = arith.constant 256 : i32
    %11 = arith.muli %arg1, %c256_i32_2 : i32
    %12 = tpu.assume_multiple %11, 256 : i32
    %13 = arith.index_cast %12 : i32 to index
    %c0_3 = arith.constant 0 : index
    %14 = vector.load %arg3[%13, %c0_3] : memref<256x256xbf16, #tpu.memory_space<vmem>>, vector<256x256xbf16>
    %cst = arith.constant dense<0.000000e+00> : vector<256x128xf32>
    %15 = tpu.matmul %14, %10, %cst {dimension_numbers = #tpu.dot_dimension_numbers<[1], [0], [0], [1], [0, 0, 1, 1], [], []>} : vector<256x256xbf16>, vector<256x128xbf16>, vector<256x128xf32> -> vector<256x128xf32>
    %c0_4 = arith.constant 0 : index
    %c0_5 = arith.constant 0 : index
    %c0_6 = arith.constant 0 : index
    %16 = vector.load %arg5[%c0_4, %c0_5, %c0_6] : memref<1x1x128xf32, #tpu.memory_space<vmem>>, vector<1x1x128xf32>
    %17 = vector.shape_cast %16 : vector<1x1x128xf32> to vector<1x128xf32>
    %18 = vector.broadcast %17 : vector<1x128xf32> to vector<256x128xf32>
    %19 = arith.addf %15, %18 : vector<256x128xf32>
    %c2_i32_7 = arith.constant 2 : i32
    %20 = arith.cmpi slt, %arg0, %c2_i32_7 : i32
    %21 = arith.extui %20 : i1 to i32
    %c0_i32_8 = arith.constant 0 : i32
    %22 = arith.cmpi ne, %21, %c0_i32_8 : i32
    scf.if %22 {
      %cst_11 = arith.constant 0.000000e+00 : f32
      %26 = vector.broadcast %cst_11 : f32 to vector<256x128xf32>
      %27 = arith.maximumf %19, %26 : vector<256x128xf32>
      %28 = arith.truncf %27 : vector<256x128xf32> to vector<256x128xbf16>
      %c0_12 = arith.constant 0 : index
      %c0_13 = arith.constant 0 : index
      %c0_14 = arith.constant 0 : index
      %29 = vector.load %arg4[%c0_12, %c0_13, %c0_14] : memref<1x128x128xbf16, #tpu.memory_space<vmem>>, vector<1x128x128xbf16>
      %30 = vector.shape_cast %29 : vector<1x128x128xbf16> to vector<128x128xbf16>
      %cst_15 = arith.constant dense<0.000000e+00> : vector<256x128xf32>
      %31 = tpu.matmul %28, %30, %cst_15 {dimension_numbers = #tpu.dot_dimension_numbers<[1], [0], [0], [1], [0, 0, 1, 1], [], []>} : vector<256x128xbf16>, vector<128x128xbf16>, vector<256x128xf32> -> vector<256x128xf32>
      %c256_i32_16 = arith.constant 256 : i32
      %32 = arith.muli %6, %c256_i32_16 : i32
      %c256_i32_17 = arith.constant 256 : i32
      %33 = arith.muli %arg1, %c256_i32_17 : i32
      %34 = arith.addi %32, %33 : i32
      %35 = tpu.assume_multiple %34, 256 : i32
      %36 = arith.truncf %31 : vector<256x128xf32> to vector<256x128xbf16>
      %37 = arith.index_cast %35 : i32 to index
      %c0_18 = arith.constant 0 : index
      %38 = vector.load %arg7[%37, %c0_18] : memref<512x128xbf16, #tpu.memory_space<vmem>>, vector<256x128xbf16>
      tpu.vector_store %arg7[%37, %c0_18], %36 {strides = array<i32>} : memref<512x128xbf16, #tpu.memory_space<vmem>>, vector<256x128xbf16>,
    } else {
    }
    %c2_i32_9 = arith.constant 2 : i32
    %23 = arith.cmpi eq, %arg0, %c2_i32_9 : i32
    %24 = arith.extui %23 : i1 to i32
    %c0_i32_10 = arith.constant 0 : i32
    %25 = arith.cmpi ne, %24, %c0_i32_10 : i32
    scf.if %25 {
      %c0_11 = arith.constant 0 : index
      %c0_12 = arith.constant 0 : index
      %26 = vector.load %arg6[%c0_11, %c0_12] : memref<256x128xf32, #tpu.memory_space<vmem>>, vector<256x128xf32>
      tpu.vector_store %arg6[%c0_11, %c0_12], %19 {strides = array<i32>} : memref<256x128xf32, #tpu.memory_space<vmem>>, vector<256x128xf32>,
    } else {
    }
    return
  }
  func.func @transform_1(%arg0: i32, %arg1: i32) -> (i32, i32) {
    %c0_i32 = arith.constant 0 : i32
    %c0_i32_0 = arith.constant 0 : i32
    %c0_i32_1 = arith.constant 0 : i32
    return %c0_i32, %c0_i32_0 : i32, i32
  }
  func.func @transform_2(%arg0: i32, %arg1: i32) -> (i32, i32, i32) {
    %c1_i32 = arith.constant 1 : i32
    %0 = arith.minsi %arg0, %c1_i32 : i32
    %c0_i32 = arith.constant 0 : i32
    %c0_i32_0 = arith.constant 0 : i32
    %c0_i32_1 = arith.constant 0 : i32
    return %0, %c0_i32, %c0_i32_0 : i32, i32, i32
  }
  func.func @transform_3(%arg0: i32, %arg1: i32) -> (i32, i32, i32) {
    %c0_i32 = arith.constant 0 : i32
    %c0_i32_0 = arith.constant 0 : i32
    %c0_i32_1 = arith.constant 0 : i32
    return %arg0, %c0_i32, %c0_i32_0 : i32, i32, i32
  }
  func.func @transform_4(%arg0: i32, %arg1: i32) -> (i32, i32) {
    %c2_i32 = arith.constant 2 : i32
    %0 = arith.cmpi eq, %arg0, %c2_i32 : i32
    %c0_i32 = arith.constant 0 : i32
    %1 = arith.select %0, %arg1, %c0_i32 : i32
    %c0_i32_0 = arith.constant 0 : i32
    %c0_i32_1 = arith.constant 0 : i32
    return %1, %c0_i32_0 : i32, i32
  }
}

</mosaic_0001>

<bundles_post_ra>
// kernel: gcn_forward.1
= control target key start
LH: loop header
LB: loop body
LE: loop exit
PB: predicated region body
PF: predicated region fallthrough
CT: control target
= control target key end

     0   :  { %s2028_s15 = smov 0   ;;  %s2030_s16 = smov 0   ;;  %s2583_s0 = inlined_call_operand.vmem [shape: bf16[512,128], index: 0, kind: input, shape index: {}]   ;;  %s2584_s1 = inlined_call_operand.vmem [shape: bf16[256,256], index: 1, kind: input, shape index: {}]   ;;  %s2585_s2 = inlined_call_operand.vmem [shape: bf16[2,128,128], index: 2, kind: input, shape index: {}]   ;;  %s2586_s3 = inlined_call_operand.vmem [shape: f32[3,1,128], index: 3, kind: input, shape index: {}]   ;;  %s2587_s4 = inlined_call_operand.vmem [shape: f32[256,128], index: 4, kind: output, shape index: {}]  }
   0x1   :  { %s2032_s17 = smov 0  }
   0x2 LB: > { %s26_s18 = sadd.s32 1, %s1997_s16  ;;  %p1428_p0 = scmp.ge.s32.totalorder %s2001_s17, 1  ;;  %s2001_s17 = sphi %s2032_s17, %s14_s17   ;;  %s1997_s16 = sphi %s2030_s16, %s2589_s16   ;;  %s1993_s15 = sphi %s2028_s15, %s2588_s15  }
   0x3   : > { %p28_p1 = scmp.ge.s32.totalorder %s26_s18, 3  ;;  %p170_p2 = scmp.lt.s32.totalorder %s2001_s17, 4 }
   0x5   : > { %s2591_s18 = smov (%p28_p1, %s26_s18), 0  ;;  %p171_p3 = pnand %p1428_p0, %p170_p2 }
   0x6   : > { %p201_p4 = scmp.lt.s32.totalorder (!%p171_p3), %s1993_s15, 1  ;;  %p210_p5 = scmp.lt.s32.totalorder (!%p171_p3), %s1993_s15, 2 }
   0x7   : > { %174 = sbr.rel (%p171_p3) target bundleno = 614 (0x266), region = 32  ;;  %p224_p6 = scmp.eq.s32.totalorder (!%p171_p3), %s1993_s15, 0 }
   0xc   : > { %s202_s19 = scalar_select %p201_p4, %s1993_s15, 1  ;;  %v263_v0 = vld [vmem:[%s2583_s0] sm:$0xff] (%p224_p6)  ;;  %v265_v1 = vld [vmem:[%s2583_s0 + $0x8] sm:$0xff] (%p224_p6)  ;;  %v267_v2 = vld [vmem:[%s2583_s0 + $0x10] sm:$0xff] (%p224_p6) }
   0xd   : > { %s2053_s20 = scalar_select %p210_p5, %s1993_s15, 2  ;;  %264 = vst [vmem:[#allocation2] sm:$0xff] (%p224_p6), %v263_v0  ;;  %266 = vst [vmem:[#allocation2 + $0x8] sm:$0xff] (%p224_p6), %v265_v1  ;;  %v269_v3 = vld [vmem:[%s2583_s0 + $0x18] sm:$0xff] (%p224_p6)  ;;  %v271_v4 = vld [vmem:[%s2583_s0 + $0x20] sm:$0xff] (%p224_p6) }
   0xe   : > { %s2593_s19 = smov (!%p201_p4, %s202_s19), 1  ;;  %229 = sbr.rel (!%p224_p6) target bundleno = 32 (0x20), region = 36  ;;  %268 = vst [vmem:[#allocation2 + $0x10] sm:$0xff] (%p224_p6), %v267_v2  ;;  %v273_v5 = vld [vmem:[%s2583_s0 + $0x28] sm:$0xff] (%p224_p6)  ;;  %270 = vst [vmem:[#allocation2 + $0x18] sm:$0xff] (%p224_p6), %v269_v3  ;;  %v275_v6 = vld [vmem:[%s2583_s0 + $0x30] sm:$0xff] (%p224_p6) }
   0xf   : > { %s212_s23 = scalar_lea.vmem %s2586_s3, %s2053_s20  ;;  %s1536_s24 = sshll.u32 %s2593_s19, 6  ;;  %272 = vst [vmem:[#allocation2 + $0x20] sm:$0xff] (%p224_p6), %v271_v4  ;;  %274 = vst [vmem:[#allocation2 + $0x28] sm:$0xff] (%p224_p6), %v273_v5  ;;  %v277_v7 = vld [vmem:[%s2583_s0 + $0x38] sm:$0xff] (%p224_p6)  ;;  %v279_v8 = vld [vmem:[%s2583_s0 + $0x40] sm:$0xff] (%p224_p6) }
  0x10   : > { %s2062_s27 = scalar_lea.vmem %s2585_s2, %s1536_s24  ;;  %276 = vst [vmem:[#allocation2 + $0x30] sm:$0xff] (%p224_p6), %v275_v6  ;;  %278 = vst [vmem:[#allocation2 + $0x38] sm:$0xff] (%p224_p6), %v277_v7  ;;  %v281_v9 = vld [vmem:[%s2583_s0 + $0x48] sm:$0xff] (%p224_p6)  ;;  %v283_v10 = vld [vmem:[%s2583_s0 + $0x50] sm:$0xff] (%p224_p6) }
  0x11   : > { %280 = vst [vmem:[#allocation2 + $0x40] sm:$0xff] (%p224_p6), %v279_v8  ;;  %v285_v11 = vld [vmem:[%s2583_s0 + $0x58] sm:$0xff] (%p224_p6)  ;;  %282 = vst [vmem:[#allocation2 + $0x48] sm:$0xff] (%p224_p6), %v281_v9  ;;  %v287_v12 = vld [vmem:[%s2583_s0 + $0x60] sm:$0xff] (%p224_p6) }
  0x12   : > { %284 = vst [vmem:[#allocation2 + $0x50] sm:$0xff] (%p224_p6), %v283_v10  ;;  %286 = vst [vmem:[#allocation2 + $0x58] sm:$0xff] (%p224_p6), %v285_v11  ;;  %v289_v13 = vld [vmem:[%s2583_s0 + $0x68] sm:$0xff] (%p224_p6)  ;;  %v291_v14 = vld [vmem:[%s2583_s0 + $0x70] sm:$0xff] (%p224_p6) }
  0x13   : > { %288 = vst [vmem:[#allocation2 + $0x60] sm:$0xff] %v287_v12  ;;  %290 = vst [vmem:[#allocation2 + $0x68] sm:$0xff] %v289_v13  ;;  %v293_v15 = vld [vmem:[%s2583_s0 + $0x78] sm:$0xff]  ;;  %v295_v16 = vld [vmem:[%s2583_s0 + $0x80] sm:$0xff] }
  0x14   : > { %292 = vst [vmem:[#allocation2 + $0x70] sm:$0xff] %v291_v14  ;;  %v297_v17 = vld [vmem:[%s2583_s0 + $0x88] sm:$0xff]  ;;  %294 = vst [vmem:[#allocation2 + $0x78] sm:$0xff] %v293_v15  ;;  %v299_v18 = vld [vmem:[%s2583_s0 + $0x90] sm:$0xff] }
  0x15   : > { %296 = vst [vmem:[#allocation2 + $0x80] sm:$0xff] %v295_v16  ;;  %298 = vst [vmem:[#allocation2 + $0x88] sm:$0xff] %v297_v17  ;;  %v301_v19 = vld [vmem:[%s2583_s0 + $0x98] sm:$0xff]  ;;  %v303_v20 = vld [vmem:[%s2583_s0 + $0xa0] sm:$0xff] }
  0x16   : > { %300 = vst [vmem:[#allocation2 + $0x90] sm:$0xff] %v299_v18  ;;  %302 = vst [vmem:[#allocation2 + $0x98] sm:$0xff] %v301_v19  ;;  %v305_v21 = vld [vmem:[%s2583_s0 + $0xa8] sm:$0xff]  ;;  %v307_v22 = vld [vmem:[%s2583_s0 + $0xb0] sm:$0xff] }
  0x17   : > { %304 = vst [vmem:[#allocation2 + $0xa0] sm:$0xff] %v303_v20  ;;  %v309_v23 = vld [vmem:[%s2583_s0 + $0xb8] sm:$0xff]  ;;  %306 = vst [vmem:[#allocation2 + $0xa8] sm:$0xff] %v305_v21  ;;  %v311_v24 = vld [vmem:[%s2583_s0 + $0xc0] sm:$0xff] }
  0x18   : > { %308 = vst [vmem:[#allocation2 + $0xb0] sm:$0xff] %v307_v22  ;;  %310 = vst [vmem:[#allocation2 + $0xb8] sm:$0xff] %v309_v23  ;;  %v313_v25 = vld [vmem:[%s2583_s0 + $0xc8] sm:$0xff]  ;;  %v315_v26 = vld [vmem:[%s2583_s0 + $0xd0] sm:$0xff] }
  0x19   : > { %312 = vst [vmem:[#allocation2 + $0xc0] sm:$0xff] %v311_v24  ;;  %314 = vst [vmem:[#allocation2 + $0xc8] sm:$0xff] %v313_v25  ;;  %v317_v27 = vld [vmem:[%s2583_s0 + $0xd8] sm:$0xff]  ;;  %v319_v28 = vld [vmem:[%s2583_s0 + $0xe0] sm:$0xff] }
  0x1a   : > { %316 = vst [vmem:[#allocation2 + $0xd0] sm:$0xff] %v315_v26  ;;  %v321_v29 = vld [vmem:[%s2583_s0 + $0xe8] sm:$0xff]  ;;  %318 = vst [vmem:[#allocation2 + $0xd8] sm:$0xff] %v317_v27  ;;  %v323_v30 = vld [vmem:[%s2583_s0 + $0xf0] sm:$0xff] }
  0x1b   : > { %320 = vst [vmem:[#allocation2 + $0xe0] sm:$0xff] %v319_v28  ;;  %322 = vst [vmem:[#allocation2 + $0xe8] sm:$0xff] %v321_v29  ;;  %v325_v31 = vld [vmem:[%s2583_s0 + $0xf8] sm:$0xff] }
  0x1c   : > { %324 = vst [vmem:[#allocation2 + $0xf0] sm:$0xff] %v323_v30  ;;  %326 = vst [vmem:[#allocation2 + $0xf8] sm:$0xff] %v325_v31 }
  0x1d   : > { %334 = vsyncadd [#allocation3], 4096 }
  0x1e   : > { %1989 = dma.done.wait [#allocation3], 4096 }
  0x1f   : > { %1990 = vsyncadd [#allocation3], 4294963200 }
  0x20 PF: > { %p339_p7 = scmp.lt.s32.totalorder %s1993_s15, 0  ;;  %s340_s9 = ssub.s32 0, %s1993_s15  ;;  %v1923_v32 = vld [vmem:[%s2584_s1 + $0x4] ss:$8 sps:$4 sm:$0xff]   ;;  %v1921_v50 = vld [vmem:[%s2584_s1] ss:$8 sps:$4 sm:$0xff]  }
  0x21   : > { %s1435_s10 = smin.u32 %s1993_s15, %s340_s9  ;;  %v1926_v33 = vld [vmem:[%s2584_s1 + $0x84] ss:$8 sps:$4 sm:$0xff]   ;;  %716 = vmatprep.mubr.bf16.mxu0 %v1923_v32  ;;  %v1924_v51 = vld [vmem:[%s2584_s1 + $0x80] ss:$8 sps:$4 sm:$0xff]   ;;  %v1927_v52 = vld [vmem:[%s2584_s1 + $0x14] ss:$8 sps:$4 sm:$0xff]  }
  0x22   : > { %s342_s13 = sand.u32 1, %s1435_s10   ;;  %780 = vmatprep.mubr.bf16.mxu1 %v1926_v33  ;;  %v1929_v53 = vld [vmem:[%s2584_s1 + $0x94] ss:$8 sps:$4 sm:$0xff]   ;;  %v1931_v54 = vld [vmem:[%s2584_s1 + $0x10] ss:$8 sps:$4 sm:$0xff]   ;;  %p1487_p8 = scmp.ge.s32.totalorder %s1993_s15, 2 }
  0x23   : > { %s343_s21 = ssub.s32 0, %s342_s13  ;;  %v1932_v55 = vld [vmem:[%s2584_s1 + $0x90] ss:$8 sps:$4 sm:$0xff]   ;;  %v1933_v56 = vld [vmem:[%s2584_s1 + $0x24] ss:$8 sps:$4 sm:$0xff]  }
  0x24   : > { %s2595_s21 = smov (!%p339_p7, %s343_s21), %s342_s13  ;;  %v1935_v57 = vld [vmem:[%s2584_s1 + $0xa4] ss:$8 sps:$4 sm:$0xff]   ;;  %v1937_v58 = vld [vmem:[%s2584_s1 + $0x20] ss:$8 sps:$4 sm:$0xff]   ;;  %v1939_v60 = vld [vmem:[%s2584_s1 + $0x34] ss:$8 sps:$4 sm:$0xff]  }
  0x25   : > { %s345_s22 = ssub.s32 1, %s2595_s21  ;;  %s1436_s24 = sshll.u32 %s2595_s21, 8  ;;  %v1938_v59 = vld [vmem:[%s2584_s1 + $0xa0] ss:$8 sps:$4 sm:$0xff]   ;;  %v1941_v61 = vld [vmem:[%s2584_s1 + $0xb4] ss:$8 sps:$4 sm:$0xff]  }
  0x26   : > { %s347_s25 = sshra.s32 %s1436_s24, 3  ;;  %v1943_v62 = vld [vmem:[%s2584_s1 + $0x30] ss:$8 sps:$4 sm:$0xff]   ;;  %v1945_v0 = vld [vmem:[%s2584_s1 + $0x44] ss:$8 sps:$4 sm:$0xff]   ;;  %s1496_s20 = sshll.u32 (!%p1487_p8), %s345_s22, 8 }
  0x27   : > { %s1437_s26 = sshll.u32 %s347_s25, 2  ;;  %v1944_v63 = vld [vmem:[%s2584_s1 + $0xb0] ss:$8 sps:$4 sm:$0xff]   ;;  %v1947_v1 = vld [vmem:[%s2584_s1 + $0xc4] ss:$8 sps:$4 sm:$0xff]  }
  0x28   : > { %s2173_s28 = scalar_lea.vmem [#allocation2], %s1437_s26  ;;  %v1949_v2 = vld [vmem:[%s2584_s1 + $0x40] ss:$8 sps:$4 sm:$0xff]   ;;  %v1951_v4 = vld [vmem:[%s2584_s1 + $0x54] ss:$8 sps:$4 sm:$0xff]  }
  0x29   : > { %v1905_v34 = vld [vmem:[%s2173_s28 + $0x78] sm:$0xff]   ;;  %v1907_v36 = vld [vmem:[%s2173_s28 + $0x70] sm:$0xff]   ;;  %v1909_v38 = vld [vmem:[%s2173_s28 + $0x68] sm:$0xff]  }
  0x2a   : > { %v1906_v35 = vld [vmem:[%s2173_s28 + $0x38] sm:$0xff]   ;;  %1665 = vmatprep.subr.bf16.mxu0 %v1905_v34  ;;  %1849 = vmatprep.subr.bf16.mxu1 %v1905_v34  ;;  %v1908_v37 = vld [vmem:[%s2173_s28 + $0x30] sm:$0xff]   ;;  %v1910_v39 = vld [vmem:[%s2173_s28 + $0x28] sm:$0xff]  }
  0x2b   : > { %1666 = vmatpush3.bf16.msra.mxu0 %v1906_v35  ;;  %1857 = vmatpush3.bf16.msra.mxu1 %v1906_v35  ;;  %v1911_v40 = vld [vmem:[%s2173_s28 + $0x60] sm:$0xff]   ;;  %v1913_v42 = vld [vmem:[%s2173_s28 + $0x58] sm:$0xff]   ;;  %v1915_v44 = vld [vmem:[%s2173_s28 + $0x50] sm:$0xff]  }
  0x2c   : > { %1667 = vmatprep.subr.bf16.mxu0 %v1907_v36  ;;  %1850 = vmatprep.subr.bf16.mxu1 %v1907_v36  ;;  %v1912_v41 = vld [vmem:[%s2173_s28 + $0x20] sm:$0xff]   ;;  %v1914_v43 = vld [vmem:[%s2173_s28 + $0x18] sm:$0xff]   ;;  %v1916_v45 = vld [vmem:[%s2173_s28 + $0x10] sm:$0xff]  }
  0x2d   : > { %v1917_v46 = vld [vmem:[%s2173_s28 + $0x48] sm:$0xff]   ;;  %v1919_v48 = vld [vmem:[%s2173_s28 + $0x40] sm:$0xff]   ;;  %v1953_v5 = vld [vmem:[%s2584_s1 + $0xd4] ss:$8 sps:$4 sm:$0xff]  }
  0x2e   : > { %v1918_v47 = vld [vmem:[%s2173_s28 + $0x8] sm:$0xff]   ;;  %v1920_v49 = vld [vmem:[%s2173_s28] sm:$0xff]   ;;  %v1955_v6 = vld [vmem:[%s2584_s1 + $0x50] ss:$8 sps:$4 sm:$0xff]  }
  0x2f   : > { %1668 = vmatpush3.bf16.msra.mxu0 %v1908_v37  ;;  %1858 = vmatpush3.bf16.msra.mxu1 %v1908_v37  ;;  %v1950_v3 = vld [vmem:[%s2584_s1 + $0xc0] ss:$8 sps:$4 sm:$0xff]   ;;  %v1956_v7 = vld [vmem:[%s2584_s1 + $0xd0] ss:$8 sps:$4 sm:$0xff]   ;;  %v1957_v8 = vld [vmem:[%s2584_s1 + $0x64] ss:$8 sps:$4 sm:$0xff]  }
  0x30   : > { %1669 = vmatprep.subr.bf16.mxu0 %v1909_v38  ;;  %1851 = vmatprep.subr.bf16.mxu1 %v1909_v38  ;;  %v1959_v9 = vld [vmem:[%s2584_s1 + $0xe4] ss:$8 sps:$4 sm:$0xff]   ;;  %v1961_v10 = vld [vmem:[%s2584_s1 + $0x60] ss:$8 sps:$4 sm:$0xff]   ;;  %v1963_v12 = vld [vmem:[%s2584_s1 + $0x74] ss:$8 sps:$4 sm:$0xff]  }
  0x31   : > { %v1962_v11 = vld [vmem:[%s2584_s1 + $0xe0] ss:$8 sps:$4 sm:$0xff]   ;;  %v1965_v13 = vld [vmem:[%s2584_s1 + $0xf4] ss:$8 sps:$4 sm:$0xff]   ;;  %v1967_v14 = vld [vmem:[%s2584_s1 + $0x70] ss:$8 sps:$4 sm:$0xff]  }
  0x32   : > { %v1968_v15 = vld [vmem:[%s2584_s1 + $0xf0] ss:$8 sps:$4 sm:$0xff]   ;;  %v2286_v18 = vld [vmem:[%s212_s23] ss:$0 sm:$0xff]  ;;  %s1252_s23 = sshra.s32 (!%p1487_p8), %s1496_s20, 3 }
  0x33   : > { %1670 = vmatpush3.bf16.msra.mxu0 %v1910_v39  ;;  %1859 = vmatpush3.bf16.msra.mxu1 %v1910_v39 }
  0x34   : > { %1671 = vmatprep.subr.bf16.mxu0 %v1911_v40  ;;  %1852 = vmatprep.subr.bf16.mxu1 %v1911_v40 }
  0x37   : > { %1672 = vmatpush3.bf16.msra.mxu0 %v1912_v41  ;;  %1860 = vmatpush3.bf16.msra.mxu1 %v1912_v41 }
  0x38   : > { %1673 = vmatprep.subr.bf16.mxu0 %v1913_v42  ;;  %1853 = vmatprep.subr.bf16.mxu1 %v1913_v42 }
  0x3b   : > { %1674 = vmatpush3.bf16.msra.mxu0 %v1914_v43  ;;  %1861 = vmatpush3.bf16.msra.mxu1 %v1914_v43 }
  0x3c   : > { %1675 = vmatprep.subr.bf16.mxu0 %v1915_v44  ;;  %1854 = vmatprep.subr.bf16.mxu1 %v1915_v44 }
  0x3f   : > { %1676 = vmatpush3.bf16.msra.mxu0 %v1916_v45  ;;  %1862 = vmatpush3.bf16.msra.mxu1 %v1916_v45 }
  0x40   : > { %1677 = vmatprep.subr.bf16.mxu0 %v1917_v46  ;;  %1855 = vmatprep.subr.bf16.mxu1 %v1917_v46 }
  0x43   : > { %1678 = vmatpush3.bf16.msra.mxu0 %v1918_v47  ;;  %1863 = vmatpush3.bf16.msra.mxu1 %v1918_v47 }
  0x44   : > { %1679 = vmatprep.subr.bf16.mxu0 %v1919_v48  ;;  %1856 = vmatprep.subr.bf16.mxu1 %v1919_v48 }
  0x47   : > { %1680 = vmatpush3.bf16.msra.mxu0 %v1920_v49  ;;  %1864 = vmatpush3.bf16.msra.mxu1 %v1920_v49 }
  0x4a   : > { %717 = vmatmul.mubr.bf16.vlgmr.msra.gmra.mxu0 %v1921_v50  ;;  %781 = vmatmul.mubr.bf16.vlgmr.msra.gmra.mxu1 %v1924_v51 }
  0x4b   : > { %724 = vmatprep.mubr.bf16.mxu0 %v1927_v52  ;;  %788 = vmatprep.mubr.bf16.mxu1 %v1929_v53 }
  0x52   : > { %725 = vmatmul.mubr.bf16.gmra.mxu0 %v1931_v54  ;;  %789 = vmatmul.mubr.bf16.gmra.mxu1 %v1932_v55 }
  0x53   : > { %732 = vmatprep.mubr.bf16.mxu0 %v1933_v56  ;;  %796 = vmatprep.mubr.bf16.mxu1 %v1935_v57 }
  0x5a   : > { %733 = vmatmul.mubr.bf16.gmra.mxu0 %v1937_v58  ;;  %797 = vmatmul.mubr.bf16.gmra.mxu1 %v1938_v59 }
  0x5b   : > { %740 = vmatprep.mubr.bf16.mxu0 %v1939_v60  ;;  %804 = vmatprep.mubr.bf16.mxu1 %v1941_v61 }
  0x62   : > { %741 = vmatmul.mubr.bf16.gmra.mxu0 %v1943_v62  ;;  %805 = vmatmul.mubr.bf16.gmra.mxu1 %v1944_v63 }
  0x63   : > { %748 = vmatprep.mubr.bf16.mxu0 %v1945_v0  ;;  %812 = vmatprep.mubr.bf16.mxu1 %v1947_v1 }
  0x6a   : > { %749 = vmatmul.mubr.bf16.gmra.mxu0 %v1949_v2  ;;  %813 = vmatmul.mubr.bf16.gmra.mxu1 %v1950_v3 }
  0x6b   : > { %756 = vmatprep.mubr.bf16.mxu0 %v1951_v4  ;;  %820 = vmatprep.mubr.bf16.mxu1 %v1953_v5 }
  0x72   : > { %757 = vmatmul.mubr.bf16.gmra.mxu0 %v1955_v6  ;;  %821 = vmatmul.mubr.bf16.gmra.mxu1 %v1956_v7 }
  0x73   : > { %764 = vmatprep.mubr.bf16.mxu0 %v1957_v8  ;;  %828 = vmatprep.mubr.bf16.mxu1 %v1959_v9 }
  0x7a   : > { %765 = vmatmul.mubr.bf16.gmra.mxu0 %v1961_v10  ;;  %829 = vmatmul.mubr.bf16.gmra.mxu1 %v1962_v11 }
  0x7b   : > { %772 = vmatprep.mubr.bf16.mxu0 %v1963_v12  ;;  %836 = vmatprep.mubr.bf16.mxu1 %v1965_v13 }
  0x82   : > { %773 = vmatmul.mubr.bf16.gmra.mxu0 %v1967_v14  ;;  %837 = vmatmul.mubr.bf16.gmra.mxu1 %v1968_v15 }
 0x10a   : > { %v1681_v16 = vpop.f32.mrf.mxu0  ;;  %v1729_v17 = vpop.f32.mrf.mxu1 }
 0x10c   : > { %v1682_v19 = vpop.f32.mrf.mxu0  ;;  %v1730_v20 = vpop.f32.mrf.mxu1 }
 0x10d   : > { %v1683_v21 = vadd.f32 %v1682_v19, %v1681_v16  ;;  %v1731_v22 = vadd.f32 %v1730_v20, %v1729_v17 }
 0x10e   : > { %v1684_v23 = vpop.f32.mrf.mxu0  ;;  %v1732_v24 = vpop.f32.mrf.mxu1 }
 0x10f   : > { %v2289_v25 = vadd.f32 %v1683_v21, %v2286_v18  ;;  %v2292_v26 = vadd.f32 %v1731_v22, %v2286_v18 }
 0x110   : > { %v1685_v27 = vpop.f32.mrf.mxu0  ;;  %v1733_v28 = vpop.f32.mrf.mxu1 }
 0x111   : > { %v1686_v29 = vadd.f32 %v1685_v27, %v1684_v23  ;;  %v1734_v30 = vadd.f32 %v1733_v28, %v1732_v24 }
 0x112   : > { %v1687_v31 = vpop.f32.mrf.mxu0  ;;  %v1735_v32 = vpop.f32.mrf.mxu1 }
 0x113   : > { %v2295_v33 = vadd.f32 %v1686_v29, %v2286_v18  ;;  %v2298_v34 = vadd.f32 %v1734_v30, %v2286_v18 }
 0x114   : > { %v1688_v35 = vpop.f32.mrf.mxu0  ;;  %v1736_v36 = vpop.f32.mrf.mxu1 }
 0x115   : > { %v1689_v37 = vadd.f32 %v1688_v35, %v1687_v31  ;;  %v1737_v38 = vadd.f32 %v1736_v36, %v1735_v32 }
 0x116   : > { %v1690_v39 = vpop.f32.mrf.mxu0  ;;  %v1738_v40 = vpop.f32.mrf.mxu1 }
 0x117   : > { %v2301_v41 = vadd.f32 %v1689_v37, %v2286_v18  ;;  %v2304_v42 = vadd.f32 %v1737_v38, %v2286_v18 }
 0x118   : > { %v1691_v43 = vpop.f32.mrf.mxu0  ;;  %v1739_v44 = vpop.f32.mrf.mxu1 }
 0x119   : > { %v1692_v45 = vadd.f32 %v1691_v43, %v1690_v39  ;;  %v1740_v46 = vadd.f32 %v1739_v44, %v1738_v40 }
 0x11a   : > { %v1693_v47 = vpop.f32.mrf.mxu0  ;;  %v1741_v48 = vpop.f32.mrf.mxu1 }
 0x11b   : > { %v2307_v49 = vadd.f32 %v1692_v45, %v2286_v18  ;;  %v2310_v50 = vadd.f32 %v1740_v46, %v2286_v18 }
 0x11c   : > { %v1694_v51 = vpop.f32.mrf.mxu0  ;;  %v1742_v52 = vpop.f32.mrf.mxu1 }
 0x11d   : > { %v1695_v53 = vadd.f32 %v1694_v51, %v1693_v47  ;;  %v1743_v54 = vadd.f32 %v1742_v52, %v1741_v48 }
 0x11e   : > { %v1696_v55 = vpop.f32.mrf.mxu0  ;;  %v1744_v56 = vpop.f32.mrf.mxu1 }
 0x11f   : > { %v2313_v57 = vadd.f32 %v1695_v53, %v2286_v18  ;;  %v2316_v58 = vadd.f32 %v1743_v54, %v2286_v18 }
 0x120   : > { %v1697_v59 = vpop.f32.mrf.mxu0  ;;  %v1745_v60 = vpop.f32.mrf.mxu1 }
 0x121   : > { %v1698_v61 = vadd.f32 %v1697_v59, %v1696_v55  ;;  %v1746_v62 = vadd.f32 %v1745_v60, %v1744_v56 }
 0x122   : > { %v1699_v63 = vpop.f32.mrf.mxu0  ;;  %v1747_v0 = vpop.f32.mrf.mxu1 }
 0x123   : > { %v2319_v1 = vadd.f32 %v1698_v61, %v2286_v18  ;;  %v2322_v2 = vadd.f32 %v1746_v62, %v2286_v18 }
 0x124   : > { %v1700_v3 = vpop.f32.mrf.mxu0  ;;  %v1748_v4 = vpop.f32.mrf.mxu1 }
 0x125   : > { %v1701_v5 = vadd.f32 %v1700_v3, %v1699_v63  ;;  %v1749_v6 = vadd.f32 %v1748_v4, %v1747_v0 }
 0x126   : > { %v1702_v7 = vpop.f32.mrf.mxu0  ;;  %v1750_v8 = vpop.f32.mrf.mxu1 }
 0x127   : > { %v2325_v9 = vadd.f32 %v1701_v5, %v2286_v18  ;;  %v2328_v10 = vadd.f32 %v1749_v6, %v2286_v18 }
 0x128   : > { %v1703_v11 = vpop.f32.mrf.mxu0  ;;  %v1751_v12 = vpop.f32.mrf.mxu1 }
 0x129   : > { %v1704_v13 = vadd.f32 %v1703_v11, %v1702_v7  ;;  %v1752_v14 = vadd.f32 %v1751_v12, %v1750_v8 }
 0x12a   : > { %v1705_v15 = vpop.f32.mrf.mxu0  ;;  %v1753_v16 = vpop.f32.mrf.mxu1 }
 0x12b   : > { %v2331_v17 = vadd.f32 %v1704_v13, %v2286_v18  ;;  %v2334_v19 = vadd.f32 %v1752_v14, %v2286_v18 }
 0x12c   : > { %v1706_v20 = vpop.f32.mrf.mxu0  ;;  %v1754_v21 = vpop.f32.mrf.mxu1 }
 0x12d   : > { %v1707_v22 = vadd.f32 %v1706_v20, %v1705_v15  ;;  %v1755_v23 = vadd.f32 %v1754_v21, %v1753_v16 }
 0x12e   : > { %v1708_v24 = vpop.f32.mrf.mxu0  ;;  %v1756_v27 = vpop.f32.mrf.mxu1 }
 0x12f   : > { %v2337_v28 = vadd.f32 %v1707_v22, %v2286_v18  ;;  %v2340_v29 = vadd.f32 %v1755_v23, %v2286_v18 }
 0x130   : > { %v1709_v30 = vpop.f32.mrf.mxu0  ;;  %v1757_v31 = vpop.f32.mrf.mxu1 }
 0x131   : > { %v1710_v32 = vadd.f32 %v1709_v30, %v1708_v24  ;;  %v1758_v35 = vadd.f32 %v1757_v31, %v1756_v27 }
 0x132   : > { %v1711_v36 = vpop.f32.mrf.mxu0  ;;  %v1759_v37 = vpop.f32.mrf.mxu1 }
 0x133   : > { %v2343_v38 = vadd.f32 %v1710_v32, %v2286_v18  ;;  %v2346_v39 = vadd.f32 %v1758_v35, %v2286_v18 }
 0x134   : > { %v1712_v40 = vpop.f32.mrf.mxu0  ;;  %v1760_v43 = vpop.f32.mrf.mxu1 }
 0x135   : > { %v1713_v44 = vadd.f32 %v1712_v40, %v1711_v36  ;;  %v1761_v45 = vadd.f32 %v1760_v43, %v1759_v37 }
 0x136   : > { %v1714_v46 = vpop.f32.mrf.mxu0  ;;  %v1762_v47 = vpop.f32.mrf.mxu1 }
 0x137   : > { %v2349_v48 = vadd.f32 %v1713_v44, %v2286_v18  ;;  %v2352_v51 = vadd.f32 %v1761_v45, %v2286_v18 }
 0x138   : > { %v1715_v52 = vpop.f32.mrf.mxu0  ;;  %v1763_v53 = vpop.f32.mrf.mxu1 }
 0x139   : > { %v1716_v54 = vadd.f32 %v1715_v52, %v1714_v46  ;;  %v1764_v55 = vadd.f32 %v1763_v53, %v1762_v47 }
 0x13a   : > { %v1717_v56 = vpop.f32.mrf.mxu0  ;;  %v1765_v59 = vpop.f32.mrf.mxu1 }
 0x13b   : > { %v2355_v60 = vadd.f32 %v1716_v54, %v2286_v18  ;;  %v2358_v61 = vadd.f32 %v1764_v55, %v2286_v18 }
 0x13c   : > { %v1718_v62 = vpop.f32.mrf.mxu0  ;;  %v1766_v63 = vpop.f32.mrf.mxu1 }
 0x13d   : > { %v1719_v0 = vadd.f32 %v1718_v62, %v1717_v56  ;;  %v1767_v3 = vadd.f32 %v1766_v63, %v1765_v59 }
 0x13e   : > { %v1720_v4 = vpop.f32.mrf.mxu0  ;;  %v1768_v5 = vpop.f32.mrf.mxu1 }
 0x13f   : > { %v2361_v6 = vadd.f32 %v1719_v0, %v2286_v18  ;;  %v2364_v7 = vadd.f32 %v1767_v3, %v2286_v18 }
 0x140   : > { %v1721_v8 = vpop.f32.mrf.mxu0  ;;  %v1769_v11 = vpop.f32.mrf.mxu1 }
 0x141   : > { %v1722_v12 = vadd.f32 %v1721_v8, %v1720_v4  ;;  %v1770_v13 = vadd.f32 %v1769_v11, %v1768_v5 }
 0x142   : > { %v1723_v14 = vpop.f32.mrf.mxu0  ;;  %v1771_v15 = vpop.f32.mrf.mxu1 }
 0x143   : > { %v2367_v16 = vadd.f32 %v1722_v12, %v2286_v18  ;;  %v2370_v20 = vadd.f32 %v1770_v13, %v2286_v18 }
 0x144   : > { %v1724_v21 = vpop.f32.mrf.mxu0  ;;  %v1772_v22 = vpop.f32.mrf.mxu1 }
 0x145   : > { %v1725_v23 = vadd.f32 %v1724_v21, %v1723_v14  ;;  %v1773_v24 = vadd.f32 %v1772_v22, %v1771_v15 }
 0x146   : > { %v1726_v27 = vpop.f32.mrf.mxu0  ;;  %v1774_v30 = vpop.f32.mrf.mxu1 }
 0x147   : > { %v2373_v31 = vadd.f32 %v1725_v23, %v2286_v18  ;;  %v2376_v32 = vadd.f32 %v1773_v24, %v2286_v18  ;;  %848 = sbr.rel (%p1487_p8) target bundleno = 591 (0x24f), region = 74 }
 0x148   : > { %v1727_v35 = vpop.f32.mrf.mxu0  ;;  %v1775_v36 = vpop.f32.mrf.mxu1 }
 0x149   : > { %v1728_v37 = vadd.f32 %v1727_v35, %v1726_v27  ;;  %v1776_v40 = vadd.f32 %v1775_v36, %v1774_v30 }
 0x14b   : > { %v2379_v43 = vadd.f32 %v1728_v37, %v2286_v18  ;;  %v2382_v44 = vadd.f32 %v1776_v40, %v2286_v18 }
 0x14c   : > { %v1969_v45 = vld [vmem:[%s2062_s27 + $0x38] sm:$0xff]   ;;  %v849_v46 = vmax.f32 %v2289_v25, 0.0  ;;  %v1970_v47 = vld [vmem:[%s2062_s27 + $0x30] sm:$0xff]   ;;  %v850_v52 = vmax.f32 %v2295_v33, 0.0  ;;  %v865_v53 = vmax.f32 %v2292_v26, 0.0  ;;  %v866_v54 = vmax.f32 %v2298_v34, 0.0 }
 0x14d   : > { %1801 = vmatprep.subr.bf16.mxu0 %v1969_v45  ;;  %1865 = vmatprep.subr.bf16.mxu1 %v1969_v45  ;;  %v1971_v55 = vld [vmem:[%s2062_s27 + $0x28] sm:$0xff]   ;;  %v1972_v59 = vld [vmem:[%s2062_s27 + $0x20] sm:$0xff]   ;;  %v1973_v62 = vld [vmem:[%s2062_s27 + $0x18] sm:$0xff]   ;;  %v851_v4 = vmax.f32 %v2301_v41, 0.0  ;;  %v852_v5 = vmax.f32 %v2307_v49, 0.0  ;;  %v867_v8 = vmax.f32 %v2304_v42, 0.0 }
 0x14e   : > { %1802 = vmatpush3.bf16.msra.mxu0 %v1969_v45  ;;  %1873 = vmatpush3.bf16.msra.mxu1 %v1969_v45  ;;  %v881_v18 = vpack.c.bf16 %v850_v52, %v849_v46  ;;  %v889_v56 = vpack.c.bf16 %v866_v54, %v865_v53  ;;  %v1974_v63 = vld [vmem:[%s2062_s27 + $0x10] sm:$0xff]   ;;  %v1975_v0 = vld [vmem:[%s2062_s27 + $0x8] sm:$0xff]   ;;  %v1976_v3 = vld [vmem:[%s2062_s27] sm:$0xff]   ;;  %v868_v11 = vmax.f32 %v2310_v50, 0.0  ;;  %v853_v12 = vmax.f32 %v2313_v57, 0.0  ;;  %s1529_s27 = sshll.u32 %s1252_s23, 2 }
 0x14f   : > { %1803 = vmatprep.subr.bf16.mxu0 %v1970_v47  ;;  %1866 = vmatprep.subr.bf16.mxu1 %v1970_v47  ;;  %v854_v13 = vmax.f32 %v2319_v1, 0.0  ;;  %v869_v14 = vmax.f32 %v2316_v58, 0.0  ;;  %v870_v15 = vmax.f32 %v2322_v2, 0.0  ;;  %v882_v21 = vpack.c.bf16 %v852_v5, %v851_v4  ;;  %s2427_s14 = scalar_lea.vmem [#allocation2], %s1529_s27 }
 0x150   : > { %1817 = vmatprep.mubr.bf16.mxu0 %v881_v18  ;;  %1833 = vmatprep.mubr.bf16.mxu1 %v889_v56  ;;  %v890_v22 = vpack.c.bf16 %v868_v11, %v867_v8  ;;  %v855_v27 = vmax.f32 %v2325_v9, 0.0  ;;  %v856_v30 = vmax.f32 %v2331_v17, 0.0  ;;  %v871_v35 = vmax.f32 %v2328_v10, 0.0 }
 0x151   : > { %v883_v23 = vpack.c.bf16 %v854_v13, %v853_v12  ;;  %v891_v24 = vpack.c.bf16 %v870_v15, %v869_v14  ;;  %v872_v36 = vmax.f32 %v2334_v19, 0.0  ;;  %v857_v37 = vmax.f32 %v2337_v28, 0.0 }
 0x152   : > { %1804 = vmatpush3.bf16.msra.mxu0 %v1970_v47  ;;  %1874 = vmatpush3.bf16.msra.mxu1 %v1970_v47  ;;  %v858_v40 = vmax.f32 %v2343_v38, 0.0  ;;  %v873_v45 = vmax.f32 %v2340_v29, 0.0  ;;  %v874_v46 = vmax.f32 %v2346_v39, 0.0  ;;  %v884_v47 = vpack.c.bf16 %v856_v30, %v855_v27 }
 0x153   : > { %1805 = vmatprep.subr.bf16.mxu0 %v1971_v55  ;;  %1867 = vmatprep.subr.bf16.mxu1 %v1971_v55  ;;  %v892_v52 = vpack.c.bf16 %v872_v36, %v871_v35  ;;  %v859_v54 = vmax.f32 %v2349_v48, 0.0  ;;  %v875_v56 = vmax.f32 %v2352_v51, 0.0  ;;  %v863_v12 = vmax.f32 %v2373_v31, 0.0 }
 0x154   : > { %v885_v53 = vpack.c.bf16 %v858_v40, %v857_v37  ;;  %v893_v18 = vpack.c.bf16 %v874_v46, %v873_v45  ;;  %v864_v13 = vmax.f32 %v2379_v43, 0.0  ;;  %v879_v14 = vmax.f32 %v2376_v32, 0.0 }
 0x155   : > { %v880_v15 = vmax.f32 %v2382_v44, 0.0 }
 0x156   : > { %1806 = vmatpush3.bf16.msra.mxu0 %v1971_v55  ;;  %1875 = vmatpush3.bf16.msra.mxu1 %v1971_v55  ;;  %v860_v55 = vmax.f32 %v2355_v60, 0.0 }
 0x157   : > { %1807 = vmatprep.subr.bf16.mxu0 %v1972_v59  ;;  %1868 = vmatprep.subr.bf16.mxu1 %v1972_v59 }
 0x158   : > { %v886_v4 = vpack.c.bf16 %v860_v55, %v859_v54 }
 0x15a   : > { %1808 = vmatpush3.bf16.msra.mxu0 %v1972_v59  ;;  %1876 = vmatpush3.bf16.msra.mxu1 %v1972_v59  ;;  %v876_v59 = vmax.f32 %v2358_v61, 0.0 }
 0x15b   : > { %1809 = vmatprep.subr.bf16.mxu0 %v1973_v62  ;;  %1869 = vmatprep.subr.bf16.mxu1 %v1973_v62 }
 0x15c   : > { %v894_v5 = vpack.c.bf16 %v876_v59, %v875_v56 }
 0x15e   : > { %1810 = vmatpush3.bf16.msra.mxu0 %v1973_v62  ;;  %1877 = vmatpush3.bf16.msra.mxu1 %v1973_v62  ;;  %v861_v62 = vmax.f32 %v2361_v6, 0.0 }
 0x15f   : > { %1811 = vmatprep.subr.bf16.mxu0 %v1974_v63  ;;  %1870 = vmatprep.subr.bf16.mxu1 %v1974_v63 }
 0x162   : > { %1812 = vmatpush3.bf16.msra.mxu0 %v1974_v63  ;;  %1878 = vmatpush3.bf16.msra.mxu1 %v1974_v63  ;;  %v862_v63 = vmax.f32 %v2367_v16, 0.0 }
 0x163   : > { %1813 = vmatprep.subr.bf16.mxu0 %v1975_v0  ;;  %1871 = vmatprep.subr.bf16.mxu1 %v1975_v0 }
 0x164   : > { %v887_v8 = vpack.c.bf16 %v862_v63, %v861_v62 }
 0x166   : > { %1814 = vmatpush3.bf16.msra.mxu0 %v1975_v0  ;;  %1879 = vmatpush3.bf16.msra.mxu1 %v1975_v0  ;;  %v877_v0 = vmax.f32 %v2364_v7, 0.0 }
 0x167   : > { %1815 = vmatprep.subr.bf16.mxu0 %v1976_v3  ;;  %1872 = vmatprep.subr.bf16.mxu1 %v1976_v3 }
 0x16a   : > { %1816 = vmatpush3.bf16.msra.mxu0 %v1976_v3  ;;  %1880 = vmatpush3.bf16.msra.mxu1 %v1976_v3  ;;  %v878_v3 = vmax.f32 %v2370_v20, 0.0 }
 0x16c   : > { %v895_v11 = vpack.c.bf16 %v878_v3, %v877_v0 }
 0x16d   : > { %1818 = vmatmul.mubr.bf16.vlgmr.msra.gmra.mxu0 %v882_v21  ;;  %1834 = vmatmul.mubr.bf16.vlgmr.msra.gmra.mxu1 %v890_v22  ;;  %v888_v21 = vpack.c.bf16 %v864_v13, %v863_v12  ;;  %v896_v22 = vpack.c.bf16 %v880_v15, %v879_v14 }
 0x16e   : > { %1821 = vmatprep.mubr.bf16.mxu0 %v883_v23  ;;  %1837 = vmatprep.mubr.bf16.mxu1 %v891_v24 }
 0x175   : > { %1822 = vmatmul.mubr.bf16.gmra.mxu0 %v884_v47  ;;  %1838 = vmatmul.mubr.bf16.gmra.mxu1 %v892_v52 }
 0x176   : > { %1825 = vmatprep.mubr.bf16.mxu0 %v885_v53  ;;  %1841 = vmatprep.mubr.bf16.mxu1 %v893_v18 }
 0x17d   : > { %1826 = vmatmul.mubr.bf16.gmra.mxu0 %v886_v4  ;;  %1842 = vmatmul.mubr.bf16.gmra.mxu1 %v894_v5 }
 0x17e   : > { %1829 = vmatprep.mubr.bf16.mxu0 %v887_v8  ;;  %1845 = vmatprep.mubr.bf16.mxu1 %v895_v11 }
 0x185   : > { %1830 = vmatmul.mubr.bf16.gmra.mxu0 %v888_v21  ;;  %1846 = vmatmul.mubr.bf16.gmra.mxu1 %v896_v22 }
 0x22d   : > { %v1819_v23 = vpop.f32.mrf.mxu0  ;;  %v1835_v24 = vpop.f32.mrf.mxu1 }
 0x22f   : > { %v995_v27 = vpop.f32.mrf.mxu0  ;;  %v1059_v30 = vpop.f32.mrf.mxu1 }
 0x231   : > { %v1820_v35 = vpop.f32.mrf.mxu0  ;;  %v1836_v36 = vpop.f32.mrf.mxu1 }
 0x232   : > { %v1578_v37 = vpack.c.bf16 %v1820_v35, %v1819_v23  ;;  %v1618_v40 = vpack.c.bf16 %v1836_v36, %v1835_v24 }
 0x233   : > { %v998_v45 = vpop.f32.mrf.mxu0  ;;  %v1062_v46 = vpop.f32.mrf.mxu1 }
 0x234   : > { %1650 = vst [vmem:[%s2427_s14 + $0x8] sm:$0xff] %v1578_v37   ;;  %1658 = vst [vmem:[%s2427_s14 + $0x48] sm:$0xff] %v1618_v40   ;;  %v1573_v47 = vpack.c.bf16 %v998_v45, %v995_v27  ;;  %v1613_v52 = vpack.c.bf16 %v1062_v46, %v1059_v30 }
 0x235   : > { %v1823_v53 = vpop.f32.mrf.mxu0  ;;  %v1839_v18 = vpop.f32.mrf.mxu1 }
 0x236   : > { %1574 = vst [vmem:[%s2427_s14] sm:$0xff] %v1573_v47   ;;  %1657 = vst [vmem:[%s2427_s14 + $0x40] sm:$0xff] %v1613_v52  }
 0x237   : > { %v1011_v54 = vpop.f32.mrf.mxu0  ;;  %v1075_v55 = vpop.f32.mrf.mxu1 }
 0x239   : > { %v1824_v56 = vpop.f32.mrf.mxu0  ;;  %v1840_v59 = vpop.f32.mrf.mxu1 }
 0x23a   : > { %v1588_v62 = vpack.c.bf16 %v1824_v56, %v1823_v53  ;;  %v1628_v63 = vpack.c.bf16 %v1840_v59, %v1839_v18 }
 0x23b   : > { %v1014_v0 = vpop.f32.mrf.mxu0  ;;  %v1078_v3 = vpop.f32.mrf.mxu1 }
 0x23c   : > { %1652 = vst [vmem:[%s2427_s14 + $0x18] sm:$0xff] %v1588_v62   ;;  %1660 = vst [vmem:[%s2427_s14 + $0x58] sm:$0xff] %v1628_v63   ;;  %v1583_v4 = vpack.c.bf16 %v1014_v0, %v1011_v54  ;;  %v1623_v5 = vpack.c.bf16 %v1078_v3, %v1075_v55 }
 0x23d   : > { %v1827_v8 = vpop.f32.mrf.mxu0  ;;  %v1843_v11 = vpop.f32.mrf.mxu1 }
 0x23e   : > { %1651 = vst [vmem:[%s2427_s14 + $0x10] sm:$0xff] %v1583_v4   ;;  %1659 = vst [vmem:[%s2427_s14 + $0x50] sm:$0xff] %v1623_v5  }
 0x23f   : > { %v1027_v12 = vpop.f32.mrf.mxu0  ;;  %v1091_v13 = vpop.f32.mrf.mxu1 }
 0x241   : > { %v1828_v14 = vpop.f32.mrf.mxu0  ;;  %v1844_v15 = vpop.f32.mrf.mxu1 }
 0x242   : > { %v1598_v21 = vpack.c.bf16 %v1828_v14, %v1827_v8  ;;  %v1638_v22 = vpack.c.bf16 %v1844_v15, %v1843_v11 }
 0x243   : > { %v1030_v23 = vpop.f32.mrf.mxu0  ;;  %v1094_v24 = vpop.f32.mrf.mxu1 }
 0x244   : > { %1654 = vst [vmem:[%s2427_s14 + $0x28] sm:$0xff] %v1598_v21   ;;  %1662 = vst [vmem:[%s2427_s14 + $0x68] sm:$0xff] %v1638_v22   ;;  %v1593_v27 = vpack.c.bf16 %v1030_v23, %v1027_v12  ;;  %v1633_v30 = vpack.c.bf16 %v1094_v24, %v1091_v13 }
 0x245   : > { %v1831_v35 = vpop.f32.mrf.mxu0  ;;  %v1847_v36 = vpop.f32.mrf.mxu1 }
 0x246   : > { %1653 = vst [vmem:[%s2427_s14 + $0x20] sm:$0xff] %v1593_v27   ;;  %1661 = vst [vmem:[%s2427_s14 + $0x60] sm:$0xff] %v1633_v30  }
 0x247   : > { %v1043_v37 = vpop.f32.mrf.mxu0  ;;  %v1107_v40 = vpop.f32.mrf.mxu1 }
 0x249   : > { %v1832_v45 = vpop.f32.mrf.mxu0  ;;  %v1848_v46 = vpop.f32.mrf.mxu1 }
 0x24a   : > { %v1608_v47 = vpack.c.bf16 %v1832_v45, %v1831_v35  ;;  %v1648_v52 = vpack.c.bf16 %v1848_v46, %v1847_v36 }
 0x24b   : > { %v1046_v53 = vpop.f32.mrf.mxu0  ;;  %v1110_v18 = vpop.f32.mrf.mxu1 }
 0x24c   : > { %1656 = vst [vmem:[%s2427_s14 + $0x38] sm:$0xff] %v1608_v47   ;;  %1664 = vst [vmem:[%s2427_s14 + $0x78] sm:$0xff] %v1648_v52   ;;  %v1603_v54 = vpack.c.bf16 %v1046_v53, %v1043_v37  ;;  %v1643_v55 = vpack.c.bf16 %v1110_v18, %v1107_v40 }
 0x24e   : > { %1655 = vst [vmem:[%s2427_s14 + $0x30] sm:$0xff] %v1603_v54   ;;  %1663 = vst [vmem:[%s2427_s14 + $0x70] sm:$0xff] %v1643_v55  }
 0x24f PF: > { %p1530_p9 = scmp.ne.s32.totalorder %s1993_s15, 2 }
 0x251   : > { %1291 = sbr.rel (%p1530_p9) target bundleno = 614 (0x266), region = 78 }
 0x256   : > { %1292 = vst [vmem:[%s2587_s4] sm:$0xff] %v2289_v25  ;;  %1293 = vst [vmem:[%s2587_s4 + $0x8] sm:$0xff] %v2295_v33 }
 0x257   : > { %1294 = vst [vmem:[%s2587_s4 + $0x10] sm:$0xff] %v2301_v41  ;;  %1295 = vst [vmem:[%s2587_s4 + $0x18] sm:$0xff] %v2307_v49 }
 0x258   : > { %1296 = vst [vmem:[%s2587_s4 + $0x20] sm:$0xff] %v2313_v57  ;;  %1297 = vst [vmem:[%s2587_s4 + $0x28] sm:$0xff] %v2319_v1 }
 0x259   : > { %1298 = vst [vmem:[%s2587_s4 + $0x30] sm:$0xff] %v2325_v9  ;;  %1299 = vst [vmem:[%s2587_s4 + $0x38] sm:$0xff] %v2331_v17 }
 0x25a   : > { %1300 = vst [vmem:[%s2587_s4 + $0x40] sm:$0xff] %v2337_v28  ;;  %1301 = vst [vmem:[%s2587_s4 + $0x48] sm:$0xff] %v2343_v38 }
 0x25b   : > { %1302 = vst [vmem:[%s2587_s4 + $0x50] sm:$0xff] %v2349_v48  ;;  %1303 = vst [vmem:[%s2587_s4 + $0x58] sm:$0xff] %v2355_v60 }
 0x25c   : > { %1304 = vst [vmem:[%s2587_s4 + $0x60] sm:$0xff] %v2361_v6  ;;  %1305 = vst [vmem:[%s2587_s4 + $0x68] sm:$0xff] %v2367_v16 }
 0x25d   : > { %1306 = vst [vmem:[%s2587_s4 + $0x70] sm:$0xff] %v2373_v31  ;;  %1307 = vst [vmem:[%s2587_s4 + $0x78] sm:$0xff] %v2379_v43 }
 0x25e   : > { %1308 = vst [vmem:[%s2587_s4 + $0x80] sm:$0xff] %v2292_v26  ;;  %1309 = vst [vmem:[%s2587_s4 + $0x88] sm:$0xff] %v2298_v34 }
 0x25f   : > { %1310 = vst [vmem:[%s2587_s4 + $0x90] sm:$0xff] %v2304_v42  ;;  %1311 = vst [vmem:[%s2587_s4 + $0x98] sm:$0xff] %v2310_v50 }
 0x260   : > { %1312 = vst [vmem:[%s2587_s4 + $0xa0] sm:$0xff] %v2316_v58  ;;  %1313 = vst [vmem:[%s2587_s4 + $0xa8] sm:$0xff] %v2322_v2 }
 0x261   : > { %1314 = vst [vmem:[%s2587_s4 + $0xb0] sm:$0xff] %v2328_v10  ;;  %1315 = vst [vmem:[%s2587_s4 + $0xb8] sm:$0xff] %v2334_v19 }
 0x262   : > { %1316 = vst [vmem:[%s2587_s4 + $0xc0] sm:$0xff] %v2340_v29  ;;  %1317 = vst [vmem:[%s2587_s4 + $0xc8] sm:$0xff] %v2346_v39 }
 0x263   : > { %1318 = vst [vmem:[%s2587_s4 + $0xd0] sm:$0xff] %v2352_v51  ;;  %1319 = vst [vmem:[%s2587_s4 + $0xd8] sm:$0xff] %v2358_v61 }
 0x264   : > { %1320 = vst [vmem:[%s2587_s4 + $0xe0] sm:$0xff] %v2364_v7  ;;  %1321 = vst [vmem:[%s2587_s4 + $0xe8] sm:$0xff] %v2370_v20 }
 0x265   : > { %1322 = vst [vmem:[%s2587_s4 + $0xf0] sm:$0xff] %v2376_v32  ;;  %1323 = vst [vmem:[%s2587_s4 + $0xf8] sm:$0xff] %v2382_v44 }
 0x266 PF: > { %s14_s17 = sadd.s32 1, %s2001_s17   ;;  %s2588_s15 = smov %s1997_s16 }
 0x267   : > { %p11_p10 = scmp.ge.s32.totalorder %s14_s17, 5   ;;  %s2589_s16 = smov %s2591_s18 }
 0x269   :  { %13 = sbr.rel (!%p11_p10) target bundleno = 2 (0x2), region = 122 }
 0x26e   :  { %1352 = vsyncmov [#allocation3] }
 0x271   :  { %s1353_s13 = vpop.sfrf %1352 }
 0x272   :  { %p1535_p11 = scmp.ne.s32.totalorder %s1353_s13, 0 }
 0x274   :  { %1357 = shalt.err (%p1535_p11)  }

</bundles_post_ra>
